<compile_context>
chip_gen: v7x
topology: tpu7x:2x2x1
jax: 0.10.0
libtpu: 0.0.40
codegen_flags: <defaults>
</compile_context>

<pallas_src>
import jax
import jax.numpy as jnp
from jax.experimental import pallas as pl
from jax.experimental.pallas import tpu as pltpu


def _round_up(x, m):
    return ((x + m - 1) // m) * m


DEFAULT_BLOCK_K = 512   # K tile used only when input_dim > DEFAULT_BLOCK_K


# --------------------------------------------------------------------------
# One-time parameter packing (hoisted out of the per-call hot path).
# --------------------------------------------------------------------------
def prepare_lora_expert_params(w1, b1, w2, b2, *, block_k=DEFAULT_BLOCK_K):
    """Pack fc1/fc2 params once: bf16 weights, no rank padding, lane-dense N."""
    K, R = w1.shape
    R2, N = w2.shape
    assert R2 == R

    # K is only padded when it must be K-tiled (K > block_k); zero rows are exact.
    if K <= block_k:
        Kp, TK = K, K
    else:
        TK = block_k
        Kp = _round_up(K, TK)

    # Only the OUTPUT lane axis is padded (avoids masked vst on the store path).
    Np = _round_up(N, 128)

    w1p = jnp.zeros((Kp, R), jnp.bfloat16).at[:K, :].set(w1.astype(jnp.bfloat16))
    b1p = b1.astype(jnp.float32).reshape(1, R)
    w2p = jnp.zeros((R, Np), jnp.bfloat16).at[:, :N].set(w2.astype(jnp.bfloat16))
    b2p = jnp.zeros((1, Np), jnp.float32).at[0, :N].set(b2.astype(jnp.float32))

    return {"w1": w1p, "b1": b1p, "w2": w2p, "b2": b2p,
            "K": K, "R": R, "N": N, "TK": TK}


# --------------------------------------------------------------------------
# Fused kernel: y = relu(x @ W1 + b1) @ W2 + b2, K-tiled with f32 accumulator.
# --------------------------------------------------------------------------
def _lora_expert_kernel(x_ref, w1_ref, b1_ref, w2_ref, b2_ref, o_ref, acc_ref):
    k = pl.program_id(2)

    @pl.when(k == 0)
    def _():
        acc_ref[...] = jnp.zeros_like(acc_ref)

    # fc1 partial product: bf16 MXU inputs, f32 accumulation across the K axis.
    acc_ref[...] += jnp.dot(x_ref[...].astype(jnp.bfloat16), w1_ref[...],
                            preferred_element_type=jnp.float32)

    @pl.when(k == pl.num_programs(2) - 1)
    def _():
        h = jnp.maximum(acc_ref[...] + b1_ref[...], 0.0)      # ReLU(fc1), stays on-chip
        y = jnp.dot(h.astype(jnp.bfloat16), w2_ref[...],
                    preferred_element_type=jnp.float32)
        o_ref[...] = (y + b2_ref[...]).astype(o_ref.dtype)


def lora_expert_forward(x, params, *, block_b=256, block_n=512, out_dtype=None):
    """LoRAExpert.forward.  x: [B, K] (f32 or bf16) -> [B, N]."""
    w1p, b1p, w2p, b2p = params["w1"], params["b1"], params["w2"], params["b2"]
    K, R, N, TK = params["K"], params["R"], params["N"], params["TK"]
    Kp = w1p.shape[0]
    Np = w2p.shape[1]
    B = x.shape[0]
    if out_dtype is None:
        out_dtype = x.dtype

    # Batch tiling: small batches use one full-extent block (no pad, no copy);
    # large batches use sublane-aligned tiles (TB forced to a multiple of 8).
    if B <= block_b:
        TB, Bp = B, B
    else:
        TB = _round_up(min(block_b, B), 8)
        Bp = _round_up(B, TB)

    xb = x
    if (Bp, Kp) != (B, K):   # only pads when batch or K actually needs tiling
        xb = jnp.zeros((Bp, Kp), x.dtype).at[:B, :K].set(x)

    # Output (N) tiling: lets v7x's two TensorCores split the W2/out stream.
    block_n = _round_up(block_n, 128)
    TN = min(block_n, Np)
    if Np % TN:
        TN = 128                 # Np is always a multiple of 128
    nb, nn, nk = Bp // TB, Np // TN, Kp // TK

    def _spec(shape, index_map, *, single_buffered=False):
        # Grid-invariant blocks don't need a second pipeline buffer.
        if single_buffered:
            try:
                return pl.BlockSpec(shape, index_map,
                                    pipeline_mode=pl.Buffered(1))
            except (TypeError, AttributeError):
                pass
        return pl.BlockSpec(shape, index_map)

    in_specs = [
        pl.BlockSpec((TB, TK), lambda i, j, k: (i, k)),                     # x
        _spec((TK, R), lambda i, j, k: (k, 0), single_buffered=nk == 1),    # W1
        _spec((1, R), lambda i, j, k: (0, 0), single_buffered=True),        # b1
        _spec((R, TN), lambda i, j, k: (0, j), single_buffered=nn == 1),    # W2
        _spec((1, TN), lambda i, j, k: (0, j), single_buffered=nn == 1),    # b2
    ]
    out_spec = pl.BlockSpec((TB, TN), lambda i, j, k: (i, j))

    out = pl.pallas_call(
        _lora_expert_kernel,
        out_shape=jax.ShapeDtypeStruct((Bp, Np), out_dtype),
        grid_spec=pltpu.PrefetchScalarGridSpec(
            num_scalar_prefetch=0,
            grid=(nb, nn, nk),
            in_specs=in_specs,
            out_specs=out_spec,
            scratch_shapes=[pltpu.VMEM((TB, R), jnp.float32)],   # fc1 accumulator
        ),
        compiler_params=pltpu.CompilerParams(
            dimension_semantics=("parallel", "parallel", "arbitrary"),
            vmem_limit_bytes=32 * 1024 * 1024,
        ),
    )(xb, w1p, b1p, w2p, b2p)

    if (Bp, Np) != (B, N):
        out = out[:B, :N]
    return out


# --------------------------------------------------------------------------
# PyTorch-default-like nn.Linear init: U(-1/sqrt(fan_in), 1/sqrt(fan_in))
# --------------------------------------------------------------------------
def init_linear(key, fan_in, fan_out):
    kw, kb = jax.random.split(key)
    bound = 1.0 / jnp.sqrt(jnp.float32(fan_in))
    w = jax.random.uniform(kw, (fan_in, fan_out), jnp.float32, -bound, bound)
    b = jax.random.uniform(kb, (fan_out,), jnp.float32, -bound, bound)
    return w, b


def reference_forward_f32(x, w1, b1, w2, b2):
    h = jnp.maximum(x @ w1 + b1, 0.0)
    return h @ w2 + b2


def reference_forward_bf16(x, w1, b1, w2, b2):
    # Mirrors the kernel's precision path: bf16 MXU inputs, f32 accumulation.
    h = jnp.dot(x.astype(jnp.bfloat16), w1.astype(jnp.bfloat16),
                preferred_element_type=jnp.float32) + b1
    h = jnp.maximum(h, 0.0)
    return jnp.dot(h.astype(jnp.bfloat16), w2.astype(jnp.bfloat16),
                   preferred_element_type=jnp.float32) + b2


# --------------------------------------------------------------------------
if __name__ == "__main__":
    B = 2
    INPUT_DIM = 32
    RANK = 8
    OUTPUT_DIM = 64

    key = jax.random.PRNGKey(0)
    k1, k2, kx = jax.random.split(key, 3)

    w1, b1 = init_linear(k1, INPUT_DIM, RANK)      # fc1: input_dim -> rank
    w2, b2 = init_linear(k2, RANK, OUTPUT_DIM)     # fc2: rank -> output_dim
    x = jax.random.normal(kx, (B, INPUT_DIM), jnp.float32)

    params = prepare_lora_expert_params(w1, b1, w2, b2)   # one-time packing
    y = jax.block_until_ready(lora_expert_forward(x, params))

    y_ref_bf16 = reference_forward_bf16(x, w1, b1, w2, b2)
    y_ref_f32 = reference_forward_f32(x, w1, b1, w2, b2)

    assert y.shape == (B, OUTPUT_DIM)
    assert y.dtype == x.dtype
    assert jnp.all(jnp.isfinite(y))
    # Exact-precision-path check (kernel vs identical bf16/f32-accum reference).
    assert jnp.allclose(y, y_ref_bf16, atol=2e-3, rtol=2e-3)
    # Semantic check against the full-f32 PyTorch-equivalent forward.
    assert jnp.allclose(y, y_ref_f32, atol=5e-2, rtol=5e-2)

    print("KERNEL_OK")
</pallas_src>

<mosaic_0001>
module attributes {stable_mosaic.version = 11 : i64} {
  func.func @_lora_expert_kernel(%arg0: i32, %arg1: i32, %arg2: i32, %arg3: memref<2x32xf32, #tpu.memory_space<vmem>>, %arg4: memref<32x8xbf16, #tpu.memory_space<vmem>>, %arg5: memref<1x8xf32, #tpu.memory_space<vmem>>, %arg6: memref<8x128xbf16, #tpu.memory_space<vmem>>, %arg7: memref<1x128xf32, #tpu.memory_space<vmem>>, %arg8: memref<2x128xf32, #tpu.memory_space<vmem>>, %arg9: memref<2x8xf32, #tpu.memory_space<vmem>>) attributes {dimension_semantics = [#tpu.dimension_semantics<parallel>, #tpu.dimension_semantics<parallel>, #tpu.dimension_semantics<arbitrary>], iteration_bounds = array<i64: 1, 1, 1>, scalar_prefetch = 0 : i64, scratch_operands = 1 : i64, tpu.core_type = #tpu.core_type<tc>, window_params = [{transform_indices = @transform_0, window_bounds = array<i64: 2, 32>}, {pipeline_mode = #tpu.pipeline_mode<synchronous>, transform_indices = @transform_1, window_bounds = array<i64: 32, 8>}, {pipeline_mode = #tpu.pipeline_mode<synchronous>, transform_indices = @transform_2, window_bounds = array<i64: 1, 8>}, {pipeline_mode = #tpu.pipeline_mode<synchronous>, transform_indices = @transform_3, window_bounds = array<i64: 8, 128>}, {pipeline_mode = #tpu.pipeline_mode<synchronous>, transform_indices = @transform_4, window_bounds = array<i64: 1, 128>}, {transform_indices = @transform_5, window_bounds = array<i64: 2, 128>}]} {
    %c0_i32 = arith.constant 0 : i32
    %0 = arith.cmpi eq, %arg2, %c0_i32 : i32
    %1 = arith.extui %0 : i1 to i32
    %c0_i32_0 = arith.constant 0 : i32
    %2 = arith.cmpi ne, %1, %c0_i32_0 : i32
    scf.if %2 {
      %cst_10 = arith.constant 0.000000e+00 : f32
      %13 = vector.broadcast %cst_10 : f32 to vector<2x8xf32>
      %c0_11 = arith.constant 0 : index
      %c0_12 = arith.constant 0 : index
      %14 = vector.load %arg9[%c0_11, %c0_12] : memref<2x8xf32, #tpu.memory_space<vmem>>, vector<2x8xf32>
      tpu.vector_store %arg9[%c0_11, %c0_12], %13 {strides = array<i32>} : memref<2x8xf32, #tpu.memory_space<vmem>>, vector<2x8xf32>,
    } else {
    }
    %c0 = arith.constant 0 : index
    %c0_1 = arith.constant 0 : index
    %3 = vector.load %arg9[%c0, %c0_1] : memref<2x8xf32, #tpu.memory_space<vmem>>, vector<2x8xf32>
    %c0_2 = arith.constant 0 : index
    %c0_3 = arith.constant 0 : index
    %4 = vector.load %arg3[%c0_2, %c0_3] : memref<2x32xf32, #tpu.memory_space<vmem>>, vector<2x32xf32>
    %5 = arith.truncf %4 : vector<2x32xf32> to vector<2x32xbf16>
    %c0_4 = arith.constant 0 : index
    %c0_5 = arith.constant 0 : index
    %6 = vector.load %arg4[%c0_4, %c0_5] : memref<32x8xbf16, #tpu.memory_space<vmem>>, vector<32x8xbf16>
    %cst = arith.constant dense<0.000000e+00> : vector<2x8xf32>
    %7 = tpu.matmul %5, %6, %cst {dimension_numbers = #tpu.dot_dimension_numbers<[1], [0], [0], [1], [0, 0, 1, 1], [], []>} : vector<2x32xbf16>, vector<32x8xbf16>, vector<2x8xf32> -> vector<2x8xf32>
    %8 = arith.addf %3, %7 : vector<2x8xf32>
    %c0_6 = arith.constant 0 : index
    %c0_7 = arith.constant 0 : index
    %9 = vector.load %arg9[%c0_6, %c0_7] : memref<2x8xf32, #tpu.memory_space<vmem>>, vector<2x8xf32>
    tpu.vector_store %arg9[%c0_6, %c0_7], %8 {strides = array<i32>} : memref<2x8xf32, #tpu.memory_space<vmem>>, vector<2x8xf32>,
    %c0_i32_8 = arith.constant 0 : i32
    %10 = arith.cmpi eq, %arg2, %c0_i32_8 : i32
    %11 = arith.extui %10 : i1 to i32
    %c0_i32_9 = arith.constant 0 : i32
    %12 = arith.cmpi ne, %11, %c0_i32_9 : i32
    scf.if %12 {
      %c0_10 = arith.constant 0 : index
      %c0_11 = arith.constant 0 : index
      %13 = vector.load %arg9[%c0_10, %c0_11] : memref<2x8xf32, #tpu.memory_space<vmem>>, vector<2x8xf32>
      %c0_12 = arith.constant 0 : index
      %c0_13 = arith.constant 0 : index
      %14 = vector.load %arg5[%c0_12, %c0_13] : memref<1x8xf32, #tpu.memory_space<vmem>>, vector<1x8xf32>
      %15 = vector.broadcast %14 : vector<1x8xf32> to vector<2x8xf32>
      %16 = arith.addf %13, %15 : vector<2x8xf32>
      %cst_14 = arith.constant 0.000000e+00 : f32
      %17 = vector.broadcast %cst_14 : f32 to vector<2x8xf32>
      %18 = arith.maximumf %16, %17 : vector<2x8xf32>
      %19 = arith.truncf %18 : vector<2x8xf32> to vector<2x8xbf16>
      %c0_15 = arith.constant 0 : index
      %c0_16 = arith.constant 0 : index
      %20 = vector.load %arg6[%c0_15, %c0_16] : memref<8x128xbf16, #tpu.memory_space<vmem>>, vector<8x128xbf16>
      %cst_17 = arith.constant dense<0.000000e+00> : vector<2x128xf32>
      %21 = tpu.matmul %19, %20, %cst_17 {dimension_numbers = #tpu.dot_dimension_numbers<[1], [0], [0], [1], [0, 0, 1, 1], [], []>} : vector<2x8xbf16>, vector<8x128xbf16>, vector<2x128xf32> -> vector<2x128xf32>
      %c0_18 = arith.constant 0 : index
      %c0_19 = arith.constant 0 : index
      %22 = vector.load %arg7[%c0_18, %c0_19] : memref<1x128xf32, #tpu.memory_space<vmem>>, vector<1x128xf32>
      %23 = vector.broadcast %22 : vector<1x128xf32> to vector<2x128xf32>
      %24 = arith.addf %21, %23 : vector<2x128xf32>
      %c0_20 = arith.constant 0 : index
      %c0_21 = arith.constant 0 : index
      %25 = vector.load %arg8[%c0_20, %c0_21] : memref<2x128xf32, #tpu.memory_space<vmem>>, vector<2x128xf32>
      tpu.vector_store %arg8[%c0_20, %c0_21], %24 {strides = array<i32>} : memref<2x128xf32, #tpu.memory_space<vmem>>, vector<2x128xf32>,
    } else {
    }
    return
  }
  func.func @transform_0(%arg0: i32, %arg1: i32, %arg2: i32) -> (i32, i32) {
    %c0_i32 = arith.constant 0 : i32
    return %arg0, %arg2 : i32, i32
  }
  func.func @transform_1(%arg0: i32, %arg1: i32, %arg2: i32) -> (i32, i32) {
    %c0_i32 = arith.constant 0 : i32
    %c0_i32_0 = arith.constant 0 : i32
    return %arg2, %c0_i32 : i32, i32
  }
  func.func @transform_2(%arg0: i32, %arg1: i32, %arg2: i32) -> (i32, i32) {
    %c0_i32 = arith.constant 0 : i32
    %c0_i32_0 = arith.constant 0 : i32
    %c0_i32_1 = arith.constant 0 : i32
    return %c0_i32, %c0_i32_0 : i32, i32
  }
  func.func @transform_3(%arg0: i32, %arg1: i32, %arg2: i32) -> (i32, i32) {
    %c0_i32 = arith.constant 0 : i32
    %c0_i32_0 = arith.constant 0 : i32
    return %c0_i32, %arg1 : i32, i32
  }
  func.func @transform_4(%arg0: i32, %arg1: i32, %arg2: i32) -> (i32, i32) {
    %c0_i32 = arith.constant 0 : i32
    %c0_i32_0 = arith.constant 0 : i32
    return %c0_i32, %arg1 : i32, i32
  }
  func.func @transform_5(%arg0: i32, %arg1: i32, %arg2: i32) -> (i32, i32) {
    %c0_i32 = arith.constant 0 : i32
    return %arg0, %arg1 : i32, i32
  }
}

</mosaic_0001>

<bundles_post_ra>
// kernel: tpu_custom_call.1
= control target key start
LH: loop header
LB: loop body
LE: loop exit
PB: predicated region body
PF: predicated region fallthrough
CT: control target
= control target key end

     0   :  { %v233_v1 = vmov 0.0   ;;  %vm234_vm0 = vmmov 0   ;;  %vm26_vm1 = vcmask 58368   ;;  %s298_s0 = inlined_call_operand.vmem [shape: f32[2,32], index: 0, kind: input, shape index: {}]   ;;  %s299_s1 = inlined_call_operand.vmem [shape: bf16[32,8], index: 1, kind: input, shape index: {}]   ;;  %s300_s2 = inlined_call_operand.vmem [shape: f32[1,8], index: 2, kind: input, shape index: {}]   ;;  %s301_s3 = inlined_call_operand.vmem [shape: bf16[8,128], index: 3, kind: input, shape index: {}]   ;;  %s302_s4 = inlined_call_operand.vmem [shape: f32[1,128], index: 4, kind: input, shape index: {}]   ;;  %s303_s5 = inlined_call_operand.hbm [shape: f32[2,128], index: 5, kind: output, shape index: {}]  }
   0x1   :  { %v207_v0 = vld [vmem:[%s299_s1] sm:$0xff]   ;;  %190 = vmatprep.subr.bf16.mxu0 %v233_v1  ;;  %198 = vmatprep.subr.bf16.mxu1 %v233_v1  ;;  %v208_v2 = vld [vmem:[%s299_s1 + $0x8] sm:$0xff]  }
   0x2   :  { %191 = vmatpush3.bf16.msra.mxu0 %v207_v0  ;;  %194 = vmatprep.mubr.msk.bf16.mxu0 %vm234_vm0, %v233_v1  ;;  %v29_v3 = vld [vmem:[%s298_s0] sm:$0x3] }
   0x3   :  { %10 = vsyncpa [#allocation4], 0  ;;  %192 = vmatprep.subr.bf16.mxu0 %v233_v1  ;;  %27 = vst.msk [vmem:[#allocation2] sm:$0x3] %vm26_vm1, %v233_v1  ;;  %200 = vmatprep.mubr.msk.bf16.mxu1 %vm234_vm0, %v233_v1  ;;  %v30_v4 = vpack.c.bf16 %v29_v3, %v29_v3  ;;  %vm47_vm2 = vcmask 261120   ;;  %vm120_vm3 = vcmask 1043456  }
   0x4   :  { %v108_v5 = vld [vmem:[%s301_s3] sm:$0xf]  ;;  %vm116_vm4 = vcmask 64512   ;;  %s235_s27 = smov [#allocation3]  }
   0x5   :  { %v122_v6 = vsel %vm120_vm3, %v108_v5, 0  ;;  %v182_v13 = vld [vmem:[%s300_s2] ss:$0 sm:$0xff]  ;;  %s171_s28 = sshll.u32 %s235_s27, 4  ;;  %s172_s28 = int_to_ptr.vmem [resolvable:$true] %s171_s28 }
   0x6   :  { %193 = vmatpush3.bf16.msra.mxu0 %v208_v2  ;;  %199 = vmatpush3.bf16.msra.mxu1 %v122_v6  ;;  %v183_v18 = vld [vmem:[%s302_s4] ss:$0 sm:$0xff]  ;;  %s209_s2 = scalar_lea.vmem %s172_s28, 32  ;;  %p214_p1 = scmp.lt.s32.totalorder %s172_s28, %s172_s28 }
   0x7   :  { %p210_p0 = scmp.ne.s32.totalorder %s172_s28, %s209_s2  ;;  %p215_p2 = scmp.lt.s32.totalorder %s209_s2, %s209_s2 }
   0x9   :  { %195 = vmatmul.mubr.msk.bf16.vlgmr.msra.gmra.mrb[0].mxu0 %vm47_vm2, %v30_v4  ;;  %p216_p3 = por %p215_p2, %p214_p1 }
   0xa   :  { %v28_v7 = vld [vmem:[#allocation2] sm:$0x3] }
   0xb   :  { %p217_p4 = pnand %p216_p3, %p210_p0 }
  0xdc   :  { %v85_v8 = vpop.f32.mrb[0].mxu0 }
  0xdd   :  { %v91_v9 = vadd.f32 %v85_v8, %v28_v7  ;;  %v196_v10 = vpop.f32.mrb[1].mxu0 }
  0xde   :  { %v88_v11 = vpop.f32.mrb[2].mxu0 }
  0xdf   :  { %93 = vst.msk [vmem:[#allocation2] sm:$0x3] %vm26_vm1, %v91_v9  ;;  %v197_v12 = vpop.f32.mrb[3].mxu0 }
  0xe6   :  { %v97_v14 = vld [vmem:[#allocation2] sm:$0x3] }
  0xe7   :  { %v105_v15 = vadd.f32 %v182_v13, %v97_v14 }
  0xe9   :  { %v106_v16 = vmax.f32 %v105_v15, 0.0 }
  0xeb   :  { %v107_v17 = vpack.c.bf16 %v106_v16, %v106_v16 }
  0xed   :  { %201 = vmatmul.mubr.msk.bf16.vlgmr.msra.gmra.mrb[0].mxu1 %vm116_vm4, %v107_v17 }
 0x1c0   :  { %v158_v19 = vpop.f32.mrb[0].mxu1 }
 0x1c1   :  { %v159_v20 = vadd.f32 %v183_v18, %v158_v19  ;;  %v202_v21 = vpop.f32.mrb[1].mxu1 }
 0x1c2   :  { %v161_v22 = vpop.f32.mrb[2].mxu1 }
 0x1c3   :  { %164 = vst [vmem:[#allocation3] sm:$0x3] %v159_v20  ;;  %v203_v23 = vpop.f32.mrb[3].mxu1 }
 0x1c4   :  { %220 = shalt.err (!%p217_p4)
}
 0x1c5   :  { %s221_s4 = scalar_lea.hbm %s303_s5, 32 }
 0x1c6   :  { %p222_p5 = scmp.ne.s32.totalorder %s303_s5, %s221_s4  ;;  %p225_p6 = scmp.lt.u32.totalorder %s221_s4, %s303_s5 }
 0x1c8   :  { %p227_p7 = pnand %p225_p6, %p222_p5 }
 0x1ca   :  { %230 = shalt.err (!%p227_p7)
}
 0x1cb   :  { %174 = dma.vmem_to_hbm [thread:$0]  %s172_s28, 32, %s303_s5, [#allocation4]  }
 0x1cc   :  { %231 = dma.done.wait [#allocation4], 32  }
 0x1cd   :  { %232 = vsyncadd [#allocation4], 4294967264 }
 0x1ce   :  { %178 = vsyncpa [#allocation4], 1 }

</bundles_post_ra>
